<compile_context>
chip_gen: v7x
topology: tpu7x:2x2x1
jax: 0.10.0
libtpu: 0.0.40
codegen_flags: <defaults>
</compile_context>

<pallas_src>
import functools

import jax
import jax.numpy as jnp
from jax import lax
from jax.experimental import pallas as pl
from jax.experimental.pallas import tpu as pltpu


def _picked_rowsum_kernel(score_ref, obj_ref, out_ref, *, fold_lanes: bool):
    """One N-tile: emit the sublane(-and-lane)-folded sum of score[i, obj[i]]."""
    x = score_ref[...].astype(jnp.float32)               # (tile_n, C) in-kernel upcast
    tn, C = x.shape

    targets = obj_ref[...]                                # (tile_n, 1) int32; -1 on padded rows
    cols = lax.broadcasted_iota(jnp.int32, (tn, C), 1)    # class index per lane
    # No row-validity mask: padded rows carry target = -1, which never matches
    # any column, so they contribute exactly 0 regardless of score contents.
    picked = jnp.where(cols == targets, x, jnp.float32(0.0))

    # Sublane fold: (tile_n, C) -> (tile_n//8, 8, C) -> sum over row groups.
    # Grouping every 8 rows matches the native (8,128) vreg tiling, so this is
    # pure vreg-vs-vreg VPU adds (no XLU, no scalar RMW chain).
    part = picked.reshape(tn // 8, 8, C).sum(axis=0)      # (8, C)

    if fold_lanes:
        # Lane fold with static 128-lane slices (lane-tile aligned -> cheap
        # vreg adds, no relayout). Gives an unmasked, lane-dense (8,128) store.
        acc = part[:, 0:128]
        for g in range(1, C // 128):
            acc = acc + part[:, g * 128:(g + 1) * 128]
        out_ref[...] = acc                                 # (8, 128)
    else:
        out_ref[...] = part                                # (8, C) fallback (C % 128 != 0)


def cygnet_loss(score: jax.Array, obj: jax.Array, reg: jax.Array,
                reg_term: float = 0.01,
                block_budget_bytes: int = 8 << 20) -> jax.Array:
    """Pallas implementation of CyGNetLoss.forward.

    score : [N, C] log-probabilities (f32 or bf16 — streamed in native dtype)
    obj   : [N]    int target class per example (assumed valid in [0, C))
    reg   : scalar regularization term
    """
    N, C = score.shape
    itemsize = jnp.dtype(score.dtype).itemsize

    # Generation-aware physical VMEM ceiling, with a conservative fallback
    # (64 MiB = smallest per-TensorCore VMEM across v5e/v6e/v7x).
    vmem_cap = 64 << 20
    try:
        vmem_cap = int(pltpu.get_tpu_info().vmem_capacity_bytes)
    except Exception:
        pass

    # Per-row VMEM cost of one tile buffer: score row + lane-padded obj row.
    # A (tile_n, 1) int32 block is padded to 128 lanes in VMEM -> 512 B/row.
    bytes_per_row = C * itemsize + 128 * 4
    total_score_bytes = N * C * itemsize

    # Effective per-buffer budget:
    #  * <= half the physical VMEM minus fixed headroom (double buffering),
    #  * <= half the whole problem, so num_tiles >= 2 whenever possible
    #    (lets v7x's two TensorCores both work on the "parallel" grid axis).
    budget_cap = max((vmem_cap - (12 << 20)) // 2, 1 << 20)
    budget_eff = min(block_budget_bytes, budget_cap, max(total_score_bytes // 2, 1))

    rows = max(8, (budget_eff // bytes_per_row) // 8 * 8)
    n_ceil = ((N + 7) // 8) * 8
    tile_n = int(min(rows, n_ceil))
    num_tiles = int(pl.cdiv(N, tile_n))
    padded_n = num_tiles * tile_n

    # Lane-fold the partial to (8, 128) when C allows (unmasked lane-dense vst).
    fold_lanes = (C % 128) == 0
    out_cols = 128 if fold_lanes else C

    # Pad obj to the grid extent with an out-of-range sentinel so the kernel
    # needs no per-element row-validity mask in the hot path.
    obj2d = jnp.full((padded_n, 1), -1, dtype=jnp.int32)
    obj2d = obj2d.at[:N, 0].set(obj.astype(jnp.int32))

    kernel = functools.partial(_picked_rowsum_kernel, fold_lanes=fold_lanes)

    # VMEM footprint (double-buffered): score tile + lane-padded obj tile + out.
    score_block = tile_n * C * itemsize
    obj_block = tile_n * 128 * 4
    out_block = 8 * out_cols * 4
    vmem_needed = 2 * (score_block + obj_block + out_block) + (2 << 20)
    vmem_limit = int(min(max(vmem_needed, 16 << 20),
                         max(vmem_cap - (4 << 20), vmem_needed)))

    cost = pl.CostEstimate(
        flops=int(3 * N * C),                  # compare + select + fold-add per element
        transcendentals=0,
        bytes_accessed=int(total_score_bytes + padded_n * 4
                           + num_tiles * 8 * out_cols * 4),
    )

    partials = pl.pallas_call(
        kernel,
        out_shape=jax.ShapeDtypeStruct((num_tiles * 8, out_cols), jnp.float32),
        grid=(num_tiles,),
        in_specs=[
            pl.BlockSpec((tile_n, C), lambda i: (i, 0)),   # score tile (native dtype)
            pl.BlockSpec((tile_n, 1), lambda i: (i, 0)),   # obj tile (sentinel-padded)
        ],
        out_specs=pl.BlockSpec((8, out_cols), lambda i: (i, 0)),
        compiler_params=pltpu.CompilerParams(
            dimension_semantics=("parallel",),             # independent tiles -> v7x megacore
            vmem_limit_bytes=vmem_limit,
        ),
        cost_estimate=cost,
    )(score, obj2d)

    # Trivial scalar epilogue in the wrapper: mean + reg term.
    picked_sum = jnp.sum(partials)
    reg_f32 = jnp.asarray(reg, jnp.float32)
    return -(picked_sum / jnp.float32(N)) + jnp.float32(reg_term) * reg_f32


def cygnet_loss_ref(score, obj, reg, reg_term=0.01):
    picked = score.astype(jnp.float32)[jnp.arange(score.shape[0]), obj]
    return -jnp.mean(picked) + jnp.float32(reg_term) * jnp.asarray(reg, jnp.float32)


if __name__ == "__main__":
    key = jax.random.PRNGKey(0)
    k1, k2, k3, k4, k5, k6, k7 = jax.random.split(key, 7)

    # TODO(synk): dgl graph unpacking (unpack_graph) has no Pallas equivalent;
    # the kernel consumes the already-unpacked `obj` index vector.
    # TODO(synk): the biggest remaining win is fusing the NLL pick into the
    # log_softmax producer so the N x C score matrix never round-trips HBM;
    # out of scope here since the module's forward takes `score` as an input.

    # --- Test 1: demo shape (f32, C % 128 == 0 -> (8,128) lane-folded partials) ---
    N, C = 16, 128  # 16 (sub, rel) queries, 128 candidate entities
    logits = jax.random.normal(k1, (N, C), dtype=jnp.float32)
    score = jax.nn.log_softmax(logits, axis=-1)            # nll_loss expects log-probs
    obj = jax.random.randint(k2, (N,), 0, C, dtype=jnp.int32)
    reg = jnp.abs(jax.random.normal(k3, (), dtype=jnp.float32))

    out = jax.block_until_ready(cygnet_loss(score, obj, reg, reg_term=0.01))
    ref = cygnet_loss_ref(score, obj, reg, reg_term=0.01)
    assert jnp.allclose(out, ref, rtol=1e-5, atol=1e-5), (out, ref)

    # --- Test 2: multi-tile, non-divisible N, bf16 score (in-kernel upcast,
    #             sentinel-padded tail rows) ---
    N2, C2 = 515, 256
    logits2 = jax.random.normal(k4, (N2, C2), dtype=jnp.float32)
    score2 = jax.nn.log_softmax(logits2, axis=-1).astype(jnp.bfloat16)
    obj2 = jax.random.randint(k5, (N2,), 0, C2, dtype=jnp.int32)

    out2 = jax.block_until_ready(
        cygnet_loss(score2, obj2, reg, reg_term=0.01, block_budget_bytes=64 * 1024))
    ref2 = cygnet_loss_ref(score2, obj2, reg, reg_term=0.01)
    assert jnp.allclose(out2, ref2, rtol=1e-4, atol=1e-4), (out2, ref2)

    # --- Test 3: C not a multiple of 128 -> (8, C) fallback partial path ---
    N3, C3 = 40, 96
    logits3 = jax.random.normal(k6, (N3, C3), dtype=jnp.float32)
    score3 = jax.nn.log_softmax(logits3, axis=-1)
    obj3 = jax.random.randint(k7, (N3,), 0, C3, dtype=jnp.int32)

    out3 = jax.block_until_ready(cygnet_loss(score3, obj3, reg, reg_term=0.01))
    ref3 = cygnet_loss_ref(score3, obj3, reg, reg_term=0.01)
    assert jnp.allclose(out3, ref3, rtol=1e-5, atol=1e-5), (out3, ref3)

    print("KERNEL_OK")
</pallas_src>

<mosaic_0001>
module attributes {stable_mosaic.version = 11 : i64} {
  func.func @_picked_rowsum_kernel(%arg0: i32, %arg1: memref<8x128xf32, #tpu.memory_space<vmem>>, %arg2: memref<8x1xi32, #tpu.memory_space<vmem>>, %arg3: memref<8x128xf32, #tpu.memory_space<vmem>>) attributes {dimension_semantics = [#tpu.dimension_semantics<parallel>], iteration_bounds = array<i64: 2>, scalar_prefetch = 0 : i64, scratch_operands = 0 : i64, tpu.core_type = #tpu.core_type<tc>, window_params = [{transform_indices = @transform_0, window_bounds = array<i64: 8, 128>}, {transform_indices = @transform_1, window_bounds = array<i64: 8, 1>}, {transform_indices = @transform_2, window_bounds = array<i64: 8, 128>}]} {
    %c0 = arith.constant 0 : index
    %c0_0 = arith.constant 0 : index
    %0 = vector.load %arg1[%c0, %c0_0] : memref<8x128xf32, #tpu.memory_space<vmem>>, vector<8x128xf32>
    %c0_1 = arith.constant 0 : index
    %c0_2 = arith.constant 0 : index
    %1 = vector.load %arg2[%c0_1, %c0_2] : memref<8x1xi32, #tpu.memory_space<vmem>>, vector<8x1xi32>
    %2 = tpu.iota {dimensions = array<i32: 1>} : vector<8x128xi32>
    %3 = vector.broadcast %1 : vector<8x1xi32> to vector<8x128xi32>
    %4 = arith.cmpi eq, %2, %3 : vector<8x128xi32>
    %cst = arith.constant 0.000000e+00 : f32
    %5 = vector.broadcast %cst : f32 to vector<8x128xf32>
    %6 = arith.select %4, %0, %5 : vector<8x128xi1>, vector<8x128xf32>
    %7 = vector.shape_cast %6 : vector<8x128xf32> to vector<1x8x128xf32>
    %cst_3 = arith.constant dense<0.000000e+00> : vector<8x128xf32>
    %8 = vector.multi_reduction <add>, %7, %cst_3 [0] : vector<1x8x128xf32> to vector<8x128xf32>
    %c0_4 = arith.constant 0 : index
    %c0_5 = arith.constant 0 : index
    %9 = vector.load %arg3[%c0_4, %c0_5] : memref<8x128xf32, #tpu.memory_space<vmem>>, vector<8x128xf32>
    tpu.vector_store %arg3[%c0_4, %c0_5], %8 {strides = array<i32>} : memref<8x128xf32, #tpu.memory_space<vmem>>, vector<8x128xf32>,
    return
  }
  func.func @transform_0(%arg0: i32) -> (i32, i32) {
    %c0_i32 = arith.constant 0 : i32
    %c0_i32_0 = arith.constant 0 : i32
    return %arg0, %c0_i32 : i32, i32
  }
  func.func @transform_1(%arg0: i32) -> (i32, i32) {
    %c0_i32 = arith.constant 0 : i32
    %c0_i32_0 = arith.constant 0 : i32
    return %arg0, %c0_i32 : i32, i32
  }
  func.func @transform_2(%arg0: i32) -> (i32, i32) {
    %c0_i32 = arith.constant 0 : i32
    %c0_i32_0 = arith.constant 0 : i32
    return %arg0, %c0_i32 : i32, i32
  }
}

</mosaic_0001>

<bundles_post_ra>
// kernel: tpu_custom_call.1
= control target key start
LH: loop header
LB: loop body
LE: loop exit
PB: predicated region body
PF: predicated region fallthrough
CT: control target
= control target key end

     0   :  { %7 = vsyncpa [#allocation3], 0  ;;  %s488_s0 = inlined_call_operand.vmem [shape: f32[16,128], index: 0, kind: input, shape index: {}]   ;;  %s489_s1 = inlined_call_operand.vmem [shape: s32[16,1], index: 1, kind: input, shape index: {}]   ;;  %s490_s2 = inlined_call_operand.hbm [shape: f32[16,128], index: 2, kind: output, shape index: {}]  }
   0x1   :  { %9 = vsyncpa [#allocation3 + $0x1], 0  ;;  %s385_s9 = smov 0   ;;  %s387_s10 = smov 0  }
   0x2   :  { %s389_s11 = smov 0   ;;  %s391_s12 = smov 0  }
   0x3 LB: > { %s406_s13 = sadd.s32 4294967295, %s366_s12   ;;  %s252_s14 = sadd.s32 4294967294, %s366_s12   ;;  %s366_s12 = sphi %s391_s12, %s496_s12   ;;  %s362_s11 = sphi %s389_s11, %s495_s11   ;;  %s358_s10 = sphi %s387_s10, %s494_s10   ;;  %s354_s9 = sphi %s385_s9, %s493_s9  }
   0x4   : > { %s410_s15 = sadd.s32 1, %s366_s12   ;;  %s74_s16 = sadd.s32 1, %s362_s11 }
   0x5   : > { %s71_s17 = ssub.s32 %s366_s12, %s410_s15  ;;  %p84_p0 = scmp.ne.s32.totalorder %s362_s11, %s358_s10 }
   0x6   : > { %p72_p1 = scmp.eq.s32.totalorder %s71_s17, 0  ;;  %p85_p2 = scmp.eq.s32.totalorder %s406_s13, 1 }
   0x7   : > { %p90_p3 = scmp.ne.s32.totalorder %s358_s10, %s354_s9  ;;  %p91_p4 = scmp.eq.s32.totalorder %s252_s14, 1 }
   0x8   : > { %s421_s18 = scalar_select %p72_p1, %s362_s11, %s74_s16  }
   0x9   : > { %p423_p5 = por %p85_p2, %p84_p0  ;;  %p427_p6 = por %p91_p4, %p90_p3 }
   0xa   : > { %p255_p7 = scmp.ge.s32.totalorder %s366_s12, 1  ;;  %p123_p8 = scmp.lt.s32.totalorder %s366_s12, 3 }
   0xc   : > { %p124_p9 = pnand %p255_p7, %p123_p8 }
   0xd   : > { %p148_p10 = scmp.lt.s32.totalorder (!%p124_p9), %s406_s13, 1  ;;  %v368_v0 = vmov (!%p124_p9), 0   ;;  %s145_s26 = sand.u32 (!%p124_p9), 1, %s358_s10   ;;  %v158_v2 = vlaneseq (!%p124_p9) }
   0xe   : > { %127 = sbr.rel (%p124_p9) target bundleno = 170 (0xaa), region = 28  ;;  %303 = vset.pattern.permute.xlu0 (!%p124_p9), %v368_v0  ;;  %s256_s27 = sshll.u32 (!%p124_p9), %s145_s26, 3 }
   0xf   : > { %v159_v3 = vand.u32 (!%p124_p9), 127, %v158_v2  ;;  %s260_s3 = sshll.u32 (!%p124_p9), %s406_s13, 7  ;;  %s147_s4 = scalar_lea.vmem (!%p124_p9), [#allocation2], %s256_s27 }
  0x10   : > { %s181_s5 = sshll.u32 (!%p124_p9), %s147_s4, 4  ;;  %s446_s8 = scalar_lea.hbm (!%p124_p9), %s490_s2, %s260_s3  ;;  %s448_s5 = int_to_ptr.vmem [resolvable:$true] %s181_s5 }
  0x11   : > { %s168_s14 = scalar_lea.sflag (!%p124_p9), [#allocation3], %s145_s26  ;;  %s304_s16 = scalar_lea.vmem (!%p124_p9), %s448_s5, 128 }
  0x12   : > { %p305_p11 = scmp.ne.s32.totalorder (!%p124_p9), %s448_s5, %s304_s16 }
  0x14   : > { %p306_p12 = pnand (!%p124_p9), %p305_p11, %p423_p5 }
  0x15   : > { %s149_s21 = scalar_select %p148_p10, %s406_s13, 1 }
  0x16   : > { %p307_p13 = pneg %p306_p12  ;;  %s369_s13 = smov [#allocation2]  }
  0x17   : > { %s257_s22 = sshll.u32 %s149_s21, 3  ;;  %s308_s17 = sshll.u32 %s369_s13, 4  ;;  %s309_s17 = int_to_ptr.vmem [resolvable:$false] %s308_s17 }
  0x18   : > { %s155_s25 = scalar_lea.vmem %s489_s1, %s257_s22  ;;  %s151_s30 = scalar_lea.vmem %s488_s0, %s257_s22 }
  0x19   : > { %v157_v1 = vld [vmem:[%s155_s25] sm:$0xff]  ;;  %s310_s21 = scalar_lea.vmem %s309_s17, 256  ;;  %p311_p0 = scmp.lt.s32.totalorder %s448_s5, %s309_s17 }
  0x1a   : > { %161 = vperm.xlu0 %303, %v157_v1   ;;  %v156_v4 = vld [vmem:[%s151_s30] sm:$0xff]  ;;  %p312_p1 = scmp.lt.s32.totalorder %s310_s21, %s304_s16 }
  0x1c   : > { %p313_p2 = por %p312_p1, %p311_p0 }
  0x1e   : > { %p314_p3 = pnand %p313_p2, %p307_p13 }
  0x99   : > { %v162_v5 = vpop.permute.xlu0 %161 }
  0x9a   : > { %vm163_vm0 = vcmp.eq.s32.totalorder %v159_v3, %v162_v5 }
  0x9b   : > { %v164_v6 = vsel %vm163_vm0, %v156_v4, 0.0 }
  0x9c   : > { %166 = vst [vmem:[%s147_s4] sm:$0xff] %v164_v6 }
  0x9d   : > { %317 = shalt.err (!%p314_p3)
}
  0x9e   : > { %s318_s22 = scalar_lea.hbm %s446_s8, 128  ;;  %s322_s25 = scalar_lea.hbm %s490_s2, 256 }
  0x9f   : > { %p319_p4 = scmp.ne.s32.totalorder %s446_s8, %s318_s22  ;;  %p323_p9 = scmp.lt.u32.totalorder %s446_s8, %s490_s2 }
  0xa0   : > { %p324_p10 = scmp.lt.u32.totalorder %s322_s25, %s318_s22  ;;  %p326_p12 = scmp.lt.u32.totalorder %s318_s22, %s446_s8 }
  0xa1   : > { %p320_p7 = pnand %p319_p4, %p423_p5 }
  0xa2   : > { %p325_p11 = por %p324_p10, %p323_p9 }
  0xa3   : > { %p321_p8 = pneg %p320_p7 }
  0xa4   : > { %p327_p13 = por %p326_p12, %p325_p11 }
  0xa6   : > { %p328_p0 = pnand %p327_p13, %p321_p8 }
  0xa8   : > { %331 = shalt.err (!%p328_p0)
}
  0xa9   : > { %263 = dma.vmem_to_hbm [thread:$0]  (%p423_p5), %s448_s5, 128, %s446_s8, %s168_s14  }
  0xaa PF: > { %p269_p1 = scmp.ge.s32.totalorder %s366_s12, 2  ;;  %s193_s28 = sand.u32 1, %s354_s9  }
  0xab   : > { %s194_s29 = scalar_lea.sflag [#allocation3], %s193_s28 }
  0xac   : > { %p266_p2 = pnand %p269_p1, %p427_p6 }
  0xae   : > { %349 = dma.done.wait (!%p266_p2), %s194_s29, 128  }
  0xaf   : > { %351 = vsyncadd (!%p266_p2), %s194_s29, 4294967168  ;;  %p12_p3 = scmp.ge.s32.totalorder %s410_s15, 4   ;;  %s493_s9 = smov %s358_s10 }
  0xb0   : > { %s494_s10 = smov %s362_s11  ;;  %s495_s11 = smov %s421_s18 }
  0xb1   : > { %s496_s12 = smov %s410_s15  ;;  %14 = sbr.rel (!%p12_p3) target bundleno = 3 (0x3), region = 66 }
  0xb8   :  { %199 = vsyncpa [#allocation3], 1 }
  0xb9   :  { %201 = vsyncpa [#allocation3 + $0x1], 1 }

</bundles_post_ra>
